<compile_context>
chip_gen: v6e
topology: v6e:2x2x1
jax: 0.10.0
libtpu: 0.0.40
codegen_flags: <defaults>
</compile_context>

<pallas_src>
import functools

import numpy as np
import jax
import jax.numpy as jnp
from jax import lax
from jax.experimental import pallas as pl
from jax.experimental.pallas import tpu as pltpu

_LANE = 128                       # vreg lane width: feature dims padded to multiples of this
_VMEM_LIMIT = 32 * 1024 * 1024    # scoped-VMEM limit safe on v5e / v6e / v7x (64 MiB phys)


def _round_up(x, m):
    return ((x + m - 1) // m) * m


def _choose_tiling(n):
    """(n_pad, tm, tk).  Small graphs -> one whole-matrix tile; large graphs -> (1024, 512)
    row/contraction tiles.  All tiles are 256-multiples (full MXU width on v6e/v7x, also
    fine on v5e's 4x128 MXU)."""
    n_pad = _round_up(max(n, 256), 256)
    if n_pad <= 1024:
        return n_pad, n_pad, n_pad
    tm, tk = 1024, 512
    return _round_up(n, 1024), tm, tk   # n_pad multiple of lcm(tm, tk) = 1024


# ---------------------------------------------------------------------------
# Kernel 1: layer-0 feature transform  XW_0 = X @ W_0   (bf16 MXU, bf16 output)
# ---------------------------------------------------------------------------
def _xw_kernel(x_ref, w_ref, o_ref):
    o_ref[...] = jnp.dot(x_ref[...], w_ref[...],
                         preferred_element_type=jnp.float32).astype(o_ref.dtype)


def _feature_transform(x_b, w_b, *, tm):
    n_pad, f_in = x_b.shape
    f_out = w_b.shape[1]
    return pl.pallas_call(
        _xw_kernel,
        out_shape=jax.ShapeDtypeStruct((n_pad, f_out), jnp.bfloat16),
        grid=(n_pad // tm,),
        in_specs=[
            pl.BlockSpec((tm, f_in), lambda i: (i, 0)),
            pl.BlockSpec((f_in, f_out), lambda i: (0, 0)),     # W is small -> stays resident
        ],
        out_specs=pl.BlockSpec((tm, f_out), lambda i: (i, 0)),
        compiler_params=pltpu.CompilerParams(
            dimension_semantics=("parallel",),
            vmem_limit_bytes=_VMEM_LIMIT),
        cost_estimate=pl.CostEstimate(
            flops=2 * n_pad * f_in * f_out,
            transcendentals=0,
            bytes_accessed=2 * n_pad * f_in + 2 * f_in * f_out + 2 * n_pad * f_out),
    )(x_b, w_b)


# ---------------------------------------------------------------------------
# Kernel 2a: hidden-layer aggregation with fused relu + next-layer transform
#   acc = A_hat @ XW_l (block-sparse, f32 acc);  epilogue: relu(acc+b) @ W_{l+1} -> bf16
# ---------------------------------------------------------------------------
def _agg_hidden_kernel(atab_ref, ktab_ref, cnt_ref,
                       a_ref, xw_ref, b_ref, wn_ref, o_ref, acc_ref):
    i = pl.program_id(0)
    k = pl.program_id(1)

    @pl.when(k == 0)
    def _():
        acc_ref[...] = jnp.zeros_like(acc_ref)

    @pl.when(k < cnt_ref[i])                      # skip MXU work on padded table slots
    def _():
        acc_ref[...] += jnp.dot(a_ref[...], xw_ref[...],
                                preferred_element_type=jnp.float32)

    @pl.when(k == pl.num_programs(1) - 1)
    def _():
        # Fused epilogue: bias + relu + next-layer X@W (bf16 out) -> removes one H
        # round trip through HBM per hidden layer (dropout is identity in eval mode).
        h = jnp.maximum(acc_ref[...] + b_ref[...], 0.0).astype(jnp.bfloat16)
        o_ref[...] = jnp.dot(h, wn_ref[...],
                             preferred_element_type=jnp.float32).astype(o_ref.dtype)


# ---------------------------------------------------------------------------
# Kernel 2b: final-layer aggregation, accumulating directly into f32 o_ref,
#   epilogue fuses bias + masked log_softmax (output stays f32 -> -1e30 mask is safe).
# ---------------------------------------------------------------------------
def _agg_final_kernel(atab_ref, ktab_ref, cnt_ref,
                      a_ref, xw_ref, b_ref, o_ref, *, n_valid_cols):
    i = pl.program_id(0)
    k = pl.program_id(1)

    @pl.when(k == 0)
    def _():
        o_ref[...] = jnp.zeros_like(o_ref)

    @pl.when(k < cnt_ref[i])
    def _():
        o_ref[...] += jnp.dot(a_ref[...], xw_ref[...],
                              preferred_element_type=jnp.float32)

    @pl.when(k == pl.num_programs(1) - 1)
    def _():
        h = o_ref[...] + b_ref[...]
        col = lax.broadcasted_iota(jnp.int32, h.shape, 1)
        h = jnp.where(col < n_valid_cols, h, -1e30)   # mask padded class columns
        m = jnp.max(h, axis=1, keepdims=True)
        s = h - m
        o_ref[...] = s - jnp.log(jnp.sum(jnp.exp(s), axis=1, keepdims=True))


def _aggregate(a_packed, xw, bias, atab, ktab, cnt, *, tm, tk, max_cnt,
               w_next=None, n_valid_cols=None):
    n_pad, f_out = xw.shape
    nr = n_pad // tm
    nblk = a_packed.shape[0]

    # Packed-A / XW indirection through the scalar-prefetched 1D tables.
    a_spec = pl.BlockSpec((None, tm, tk),
                          lambda i, k, at, kt, c: (at[i * max_cnt + k], 0, 0))
    xw_spec = pl.BlockSpec((tk, f_out),
                           lambda i, k, at, kt, c: (kt[i * max_cnt + k], 0))
    b_spec = pl.BlockSpec((1, f_out), lambda i, k, at, kt, c: (0, 0))
    # NOTE: pipeline_mode=pl.Buffered(3) on a_spec/xw_spec can help v5e hide the
    # irregular block-sparse fetch latency; left at the default double-buffering here.

    flops_agg = 2 * nblk * tm * tk * f_out
    bytes_a = 2 * nblk * tm * tk
    bytes_xw = 2 * nr * n_pad * f_out             # XW re-read once per row tile (upper bound)
    cparams = pltpu.CompilerParams(
        dimension_semantics=("parallel", "arbitrary"),
        vmem_limit_bytes=_VMEM_LIMIT)

    if w_next is not None:
        f_next = w_next.shape[1]
        grid_spec = pltpu.PrefetchScalarGridSpec(
            num_scalar_prefetch=3,
            grid=(nr, max_cnt),
            in_specs=[a_spec, xw_spec, b_spec,
                      pl.BlockSpec((f_out, f_next), lambda i, k, at, kt, c: (0, 0))],
            out_specs=pl.BlockSpec((tm, f_next), lambda i, k, at, kt, c: (i, 0)),
            scratch_shapes=[pltpu.VMEM((tm, f_out), jnp.float32)],
        )
        return pl.pallas_call(
            _agg_hidden_kernel,
            grid_spec=grid_spec,
            out_shape=jax.ShapeDtypeStruct((n_pad, f_next), jnp.bfloat16),
            compiler_params=cparams,
            cost_estimate=pl.CostEstimate(
                flops=flops_agg + 2 * n_pad * f_out * f_next,
                transcendentals=0,
                bytes_accessed=bytes_a + bytes_xw + 2 * f_out * f_next + 2 * n_pad * f_next),
        )(atab, ktab, cnt, a_packed, xw, bias, w_next)

    kernel = functools.partial(_agg_final_kernel, n_valid_cols=n_valid_cols)
    grid_spec = pltpu.PrefetchScalarGridSpec(
        num_scalar_prefetch=3,
        grid=(nr, max_cnt),
        in_specs=[a_spec, xw_spec, b_spec],
        out_specs=pl.BlockSpec((tm, f_out), lambda i, k, at, kt, c: (i, 0)),
        scratch_shapes=[],
    )
    return pl.pallas_call(
        kernel,
        grid_spec=grid_spec,
        out_shape=jax.ShapeDtypeStruct((n_pad, f_out), jnp.float32),
        compiler_params=cparams,
        cost_estimate=pl.CostEstimate(
            flops=flops_agg,
            transcendentals=n_pad * f_out,
            bytes_accessed=bytes_a + bytes_xw + 4 * n_pad * f_out),
    )(atab, ktab, cnt, a_packed, xw, bias)


# ---------------------------------------------------------------------------
# Host-side graph preprocessing (static per graph): normalized adjacency,
# block-sparse packing and 1D scalar-prefetch tables.
# ---------------------------------------------------------------------------
def build_normalized_adjacency(edge_index, num_nodes):
    """A_hat = D^{-1/2}(A + I)D^{-1/2} from a [2, E] edge_index (messages src -> dst)."""
    edge_index = np.asarray(edge_index)
    src, dst = edge_index[0], edge_index[1]
    a = np.zeros((num_nodes, num_nodes), np.float32)
    a[dst, src] = 1.0                                          # A[i, j] = 1 iff edge j -> i
    a = np.maximum(a, np.eye(num_nodes, dtype=np.float32))     # add self loops
    deg = a.sum(axis=1)
    d = (1.0 / np.sqrt(np.maximum(deg, 1.0))).astype(np.float32)
    return a * d[:, None] * d[None, :]


def _build_block_sparse(a_pad, tm, tk):
    """Pack the nonzero (tm, tk) tiles of A_hat contiguously.

    Returns (a_packed (nblk,tm,tk) f32, atab (nr*max_cnt,), ktab (nr*max_cnt,),
             cnt (nr,), max_cnt).  Padding slots repeat the previous entry so consecutive
    grid steps see an unchanged block index (no redundant DMA); MXU work is gated on
    k < cnt[i] in-kernel.  max_cnt is the static contraction-grid extent.
    """
    n_pad = a_pad.shape[0]
    nr, nk = n_pad // tm, n_pad // tk
    blocks = a_pad.reshape(nr, tm, nk, tk).transpose(0, 2, 1, 3)   # (nr, nk, tm, tk)
    nnz = np.any(blocks != 0.0, axis=(2, 3))
    cnt = nnz.sum(axis=1).astype(np.int32)
    max_cnt = int(max(int(cnt.max()), 1))

    packed = []
    atab = np.zeros((nr, max_cnt), np.int32)
    ktab = np.zeros((nr, max_cnt), np.int32)
    for i in range(nr):
        cols = np.nonzero(nnz[i])[0]
        if cols.size == 0:                 # all-zero row tile: compute fully gated off
            continue
        for s in range(max_cnt):
            if s < cols.size:
                ktab[i, s] = int(cols[s])
                atab[i, s] = len(packed)
                packed.append(blocks[i, cols[s]])
            else:                          # repeat last valid slot -> no extra DMA
                ktab[i, s] = ktab[i, s - 1]
                atab[i, s] = atab[i, s - 1]
    if not packed:
        packed.append(np.zeros((tm, tk), np.float32))
    a_packed = np.stack(packed, axis=0)
    return a_packed, atab.reshape(-1), ktab.reshape(-1), cnt, max_cnt


def init_gcn_params(key, layer_dims):
    """Glorot-uniform weights (in_dim, out_dim) and zero biases, as in PyG GCNConv."""
    params = []
    for fan_in, fan_out in layer_dims:
        key, sub = jax.random.split(key)
        limit = jnp.sqrt(6.0 / (fan_in + fan_out))
        w = jax.random.uniform(sub, (fan_in, fan_out), jnp.float32, -limit, limit)
        b = jnp.zeros((1, fan_out), jnp.float32)
        params.append((w, b))
    return params


def br_gcn2_3_forward(x, edge_index, params):
    """Forward pass of brGCN2_3 (convType=0 GCNConv, eval mode; 0 in every br_multiplies[l])."""
    x = np.asarray(x, np.float32)
    n, f0 = x.shape
    num_classes = int(np.asarray(params[-1][0]).shape[1])
    n_pad, tm, tk = _choose_tiling(n)

    # ---- graph preprocessing on host (static structure; grid extents become static) ----
    a_hat = build_normalized_adjacency(edge_index, n)
    a_pad = np.zeros((n_pad, n_pad), np.float32)
    a_pad[:n, :n] = a_hat
    a_packed_np, atab_np, ktab_np, cnt_np, max_cnt = _build_block_sparse(a_pad, tm, tk)
    a_packed = jnp.asarray(a_packed_np, jnp.bfloat16)   # contiguous block-sparse bf16 MXU operand
    atab = jnp.asarray(atab_np)
    ktab = jnp.asarray(ktab_np)
    cnt = jnp.asarray(cnt_np)

    # ---- pad parameters to 128-lane multiples (weights bf16, biases f32) ----
    w_pads, b_pads = [], []
    for (w, b) in params:
        w = np.asarray(w, np.float32)
        b = np.asarray(b, np.float32).reshape(1, -1)
        f_in, f_out = w.shape
        f_in_p, f_out_p = _round_up(f_in, _LANE), _round_up(f_out, _LANE)
        wp = np.zeros((f_in_p, f_out_p), np.float32)
        wp[:f_in, :f_out] = w
        bp = np.zeros((1, f_out_p), np.float32)
        bp[:, :f_out] = b
        w_pads.append(jnp.asarray(wp, jnp.bfloat16))
        b_pads.append(jnp.asarray(bp, jnp.float32))

    # ---- layer 0 feature transform: XW_0 = X @ W_0 (no relu on layer-0 input) ----
    f0_p = _round_up(f0, _LANE)
    x_pad = np.zeros((n_pad, f0_p), np.float32)
    x_pad[:n, :f0] = x
    xw = _feature_transform(jnp.asarray(x_pad, jnp.bfloat16), w_pads[0], tm=tm)

    # "0 in br_multiplies[l]" for every layer -> brMulti == 1, bc_data_pp_2 never invoked.
    # TODO(synk): bc_data_pp_2 branch (0 not in br_multiplies[l]) is undefined in the source.
    # F.dropout(training=False) is the identity (eval mode).
    num_layers = len(params)
    out = None
    for l in range(num_layers):
        if l < num_layers - 1:
            # H_l = A_hat @ XW_l + b_l; epilogue fuses relu + next-layer X@W (bf16 out).
            xw = _aggregate(a_packed, xw, b_pads[l], atab, ktab, cnt,
                            tm=tm, tk=tk, max_cnt=max_cnt, w_next=w_pads[l + 1])
        else:
            out = _aggregate(a_packed, xw, b_pads[l], atab, ktab, cnt,
                             tm=tm, tk=tk, max_cnt=max_cnt, n_valid_cols=num_classes)
    return out[:n, :num_classes]


def reference_forward(x, edge_index, params):
    """Plain-JAX f32 reference of the same forward pass."""
    a_hat = jnp.asarray(build_normalized_adjacency(edge_index, int(np.asarray(x).shape[0])))
    h = jnp.asarray(x, jnp.float32)
    for l, (w, b) in enumerate(params):
        if l != 0:
            h = jnp.maximum(h, 0.0)
        h = a_hat @ (h @ w) + b
    return jax.nn.log_softmax(h, axis=1)


# ---------------------------------------------------------------------------
# Demo
# ---------------------------------------------------------------------------
if __name__ == "__main__":
    NUM_FEATURES = 16    # dataset.num_node_features
    HIDDEN = 32          # layer_out_dims[0]
    NUM_CLASSES = 7      # dataset.num_classes

    def run_case(key, n_nodes):
        k_x, k_p = jax.random.split(key)
        x = jax.random.normal(k_x, (n_nodes, NUM_FEATURES), jnp.float32)
        idx = np.arange(n_nodes)
        src = np.concatenate([idx, (idx + 1) % n_nodes])
        dst = np.concatenate([(idx + 1) % n_nodes, idx])
        edge_index = np.stack([src, dst]).astype(np.int32)   # bidirectional ring, [2, 2N]
        params = init_gcn_params(k_p, [(NUM_FEATURES, HIDDEN), (HIDDEN, NUM_CLASSES)])

        out = br_gcn2_3_forward(x, edge_index, params)
        jax.block_until_ready(out)

        assert out.shape == (n_nodes, NUM_CLASSES)
        # rows of log_softmax must sum to ~1 in prob space
        assert bool(jnp.allclose(jnp.sum(jnp.exp(out), axis=1), 1.0, atol=1e-3))
        # cross-check against the plain-JAX f32 reference (bf16 MXU operands -> loose atol)
        ref = reference_forward(x, edge_index, params)
        err = float(jnp.max(jnp.abs(out - ref)))
        assert err < 1e-1, err

    k0, k1 = jax.random.split(jax.random.PRNGKey(0))
    run_case(k0, 200)     # single whole-matrix aggregation tile (n_pad = 256)
    run_case(k1, 1200)    # block-sparse packed-A path (n_pad = 2048, tm=1024/tk=512 tiles)
    print("KERNEL_OK")
</pallas_src>

<mosaic_0001>
module attributes {stable_mosaic.version = 11 : i64} {
  func.func @_xw_kernel(%arg0: i32, %arg1: memref<256x128xbf16, #tpu.memory_space<vmem>>, %arg2: memref<128x128xbf16, #tpu.memory_space<vmem>>, %arg3: memref<256x128xbf16, #tpu.memory_space<vmem>>) attributes {dimension_semantics = [#tpu.dimension_semantics<parallel>], iteration_bounds = array<i64: 1>, scalar_prefetch = 0 : i64, scratch_operands = 0 : i64, tpu.core_type = #tpu.core_type<tc>, window_params = [{transform_indices = @transform_0, window_bounds = array<i64: 256, 128>}, {pipeline_mode = #tpu.pipeline_mode<synchronous>, transform_indices = @transform_1, window_bounds = array<i64: 128, 128>}, {transform_indices = @transform_2, window_bounds = array<i64: 256, 128>}]} {
    %c0 = arith.constant 0 : index
    %c0_0 = arith.constant 0 : index
    %0 = vector.load %arg1[%c0, %c0_0] : memref<256x128xbf16, #tpu.memory_space<vmem>>, vector<256x128xbf16>
    %c0_1 = arith.constant 0 : index
    %c0_2 = arith.constant 0 : index
    %1 = vector.load %arg2[%c0_1, %c0_2] : memref<128x128xbf16, #tpu.memory_space<vmem>>, vector<128x128xbf16>
    %cst = arith.constant dense<0.000000e+00> : vector<256x128xf32>
    %2 = tpu.matmul %0, %1, %cst {dimension_numbers = #tpu.dot_dimension_numbers<[1], [0], [0], [1], [0, 0, 1, 1], [], []>} : vector<256x128xbf16>, vector<128x128xbf16>, vector<256x128xf32> -> vector<256x128xf32>
    %3 = arith.truncf %2 : vector<256x128xf32> to vector<256x128xbf16>
    %c0_3 = arith.constant 0 : index
    %c0_4 = arith.constant 0 : index
    %4 = vector.load %arg3[%c0_3, %c0_4] : memref<256x128xbf16, #tpu.memory_space<vmem>>, vector<256x128xbf16>
    tpu.vector_store %arg3[%c0_3, %c0_4], %3 {strides = array<i32>} : memref<256x128xbf16, #tpu.memory_space<vmem>>, vector<256x128xbf16>,
    return
  }
  func.func @transform_0(%arg0: i32) -> (i32, i32) {
    %c0_i32 = arith.constant 0 : i32
    %c0_i32_0 = arith.constant 0 : i32
    return %arg0, %c0_i32 : i32, i32
  }
  func.func @transform_1(%arg0: i32) -> (i32, i32) {
    %c0_i32 = arith.constant 0 : i32
    %c0_i32_0 = arith.constant 0 : i32
    %c0_i32_1 = arith.constant 0 : i32
    return %c0_i32, %c0_i32_0 : i32, i32
  }
  func.func @transform_2(%arg0: i32) -> (i32, i32) {
    %c0_i32 = arith.constant 0 : i32
    %c0_i32_0 = arith.constant 0 : i32
    return %arg0, %c0_i32 : i32, i32
  }
}

</mosaic_0001>

<bundles_post_ra>
// kernel: tpu_custom_call.1
= control target key start
LH: loop header
LB: loop body
LE: loop exit
PB: predicated region body
PF: predicated region fallthrough
CT: control target
= control target key end

     0   :  { %7 = vsyncpa [#allocation3], 0  ;;  %s976_s0 = inlined_call_operand.hbm [shape: bf16[256,128], index: 0, kind: input, shape index: {}]   ;;  %s977_s1 = inlined_call_operand.hbm [shape: bf16[128,128], index: 1, kind: input, shape index: {}]   ;;  %s978_s2 = inlined_call_operand.hbm [shape: bf16[256,128], index: 2, kind: output, shape index: {}]  }
   0x1   :  { %8 = vsyncpa [#allocation6], 0 }
   0x2   :  { %9 = vsyncpa [#allocation4], 0  ;;  %s938_s9 = smov [#allocation2]  }
   0x3   :  { %s15_s10 = sshll.u32 %s938_s9, 4  ;;  %s16_s10 = int_to_ptr.vmem [resolvable:$true] %s15_s10 }
   0x4   :  { %s880_s11 = scalar_lea.vmem %s16_s10, 2048  ;;  %p885_p1 = scmp.lt.s32.totalorder %s16_s10, %s16_s10 }
   0x5   :  { %p881_p0 = scmp.ne.s32.totalorder %s16_s10, %s880_s11  ;;  %p886_p2 = scmp.lt.s32.totalorder %s880_s11, %s880_s11 }
   0x7   :  { %p887_p3 = por %p886_p2, %p885_p1 }
   0x9   :  { %p888_p4 = pnand %p887_p3, %p881_p0 }
   0xb   :  { %891 = shalt.err (!%p888_p4)
}
   0xc   :  { %s939_s12 = smov 64   ;;  %s940_s13 = smov 4  }
   0xd   :  { %21 = dma.hbm_to_vmem [thread:$0]  %s976_s0, 2048, %s16_s10, [#allocation3], %s939_s12, %s939_s12, %s940_s13  }
   0xe   :  { %s941_s16 = smov [#allocation5]  }
   0xf   :  { %s27_s17 = sshll.u32 %s941_s16, 4  ;;  %s28_s17 = int_to_ptr.vmem [resolvable:$true] %s27_s17 }
  0x10   :  { %s900_s18 = scalar_lea.vmem %s28_s17, 1024  ;;  %p905_p6 = scmp.lt.s32.totalorder %s28_s17, %s28_s17 }
  0x11   :  { %p901_p5 = scmp.ne.s32.totalorder %s28_s17, %s900_s18  ;;  %p906_p7 = scmp.lt.s32.totalorder %s900_s18, %s900_s18 }
  0x13   :  { %p907_p8 = por %p906_p7, %p905_p6 }
  0x15   :  { %p908_p9 = pnand %p907_p8, %p901_p5 }
  0x17   :  { %911 = shalt.err (!%p908_p9)
}
  0x18   :  { %33 = dma.hbm_to_vmem [thread:$0]  %s977_s1, 1024, %s28_s17, [#allocation6], %s939_s12, %s939_s12, %s940_s13  }
  0x19   :  { %932 = dma.done.wait [#allocation3], 2048  }
  0x1a   :  { %933 = vsyncadd [#allocation3], 4294965248 }
  0x1b   :  { %934 = dma.done.wait [#allocation6], 1024  }
  0x1c   :  { %935 = vsyncadd [#allocation6], 4294966272  ;;  %v848_v0 = vld [vmem:[#allocation5 + $0x38] sm:$0xff]   ;;  %v849_v1 = vld [vmem:[#allocation5 + $0x30] sm:$0xff]   ;;  %s942_s0 = smov [#allocation7]  }
  0x1d   :  { %779 = vmatprep.subr.bf16.mxu0 %v848_v0  ;;  %827 = vmatprep.subr.bf16.mxu1 %v848_v0  ;;  %v850_v2 = vld [vmem:[#allocation5 + $0x28] sm:$0xff]   ;;  %v851_v3 = vld [vmem:[#allocation5 + $0x20] sm:$0xff]   ;;  %v852_v6 = vld [vmem:[#allocation5 + $0x18] sm:$0xff]   ;;  %s559_s1 = sshll.u32 %s942_s0, 4  ;;  %s560_s1 = int_to_ptr.vmem [resolvable:$true] %s559_s1 }
  0x1e   :  { %780 = vmatpush3.bf16.msra.mxu0 %v848_v0  ;;  %835 = vmatpush3.bf16.msra.mxu1 %v848_v0  ;;  %v856_v4 = vld [vmem:[#allocation2] sm:$0xff]   ;;  %v853_v7 = vld [vmem:[#allocation5 + $0x10] sm:$0xff]   ;;  %v854_v8 = vld [vmem:[#allocation5 + $0x8] sm:$0xff]   ;;  %s912_s21 = scalar_lea.vmem %s560_s1, 2048  ;;  %p917_p11 = scmp.lt.s32.totalorder %s560_s1, %s560_s1 }
  0x1f   :  { %781 = vmatprep.subr.bf16.mxu0 %v849_v1  ;;  %828 = vmatprep.subr.bf16.mxu1 %v849_v1  ;;  %v857_v5 = vld [vmem:[#allocation2 + $0x40] sm:$0xff]   ;;  %v858_v10 = vld [vmem:[#allocation2 + $0x8] sm:$0xff]   ;;  %v860_v12 = vld [vmem:[#allocation2 + $0x10] sm:$0xff]   ;;  %p913_p10 = scmp.ne.s32.totalorder %s560_s1, %s912_s21  ;;  %p918_p12 = scmp.lt.s32.totalorder %s912_s21, %s912_s21 }
  0x20   :  { %795 = vmatprep.mubr.bf16.mxu0 %v856_v4  ;;  %811 = vmatprep.mubr.bf16.mxu1 %v857_v5  ;;  %v855_v9 = vld [vmem:[#allocation5] sm:$0xff]   ;;  %v859_v11 = vld [vmem:[#allocation2 + $0x48] sm:$0xff]   ;;  %v861_v13 = vld [vmem:[#allocation2 + $0x50] sm:$0xff]  }
  0x21   :  { %v862_v14 = vld [vmem:[#allocation2 + $0x18] sm:$0xff]   ;;  %v864_v16 = vld [vmem:[#allocation2 + $0x20] sm:$0xff]   ;;  %v866_v18 = vld [vmem:[#allocation2 + $0x28] sm:$0xff]   ;;  %p919_p13 = por %p918_p12, %p917_p11 }
  0x22   :  { %782 = vmatpush3.bf16.msra.mxu0 %v849_v1  ;;  %836 = vmatpush3.bf16.msra.mxu1 %v849_v1  ;;  %v863_v15 = vld [vmem:[#allocation2 + $0x58] sm:$0xff]   ;;  %v865_v17 = vld [vmem:[#allocation2 + $0x60] sm:$0xff]   ;;  %v867_v19 = vld [vmem:[#allocation2 + $0x68] sm:$0xff]  }
  0x23   :  { %783 = vmatprep.subr.bf16.mxu0 %v850_v2  ;;  %829 = vmatprep.subr.bf16.mxu1 %v850_v2  ;;  %v868_v20 = vld [vmem:[#allocation2 + $0x30] sm:$0xff]   ;;  %v870_v22 = vld [vmem:[#allocation2 + $0x38] sm:$0xff]   ;;  %p920_p0 = pnand %p919_p13, %p913_p10 }
  0x24   :  { %v869_v21 = vld [vmem:[#allocation2 + $0x70] sm:$0xff]   ;;  %v871_v23 = vld [vmem:[#allocation2 + $0x78] sm:$0xff]  }
  0x26   :  { %784 = vmatpush3.bf16.msra.mxu0 %v850_v2  ;;  %837 = vmatpush3.bf16.msra.mxu1 %v850_v2 }
  0x27   :  { %785 = vmatprep.subr.bf16.mxu0 %v851_v3  ;;  %830 = vmatprep.subr.bf16.mxu1 %v851_v3 }
  0x2a   :  { %786 = vmatpush3.bf16.msra.mxu0 %v851_v3  ;;  %838 = vmatpush3.bf16.msra.mxu1 %v851_v3 }
  0x2b   :  { %787 = vmatprep.subr.bf16.mxu0 %v852_v6  ;;  %831 = vmatprep.subr.bf16.mxu1 %v852_v6 }
  0x2e   :  { %788 = vmatpush3.bf16.msra.mxu0 %v852_v6  ;;  %839 = vmatpush3.bf16.msra.mxu1 %v852_v6 }
  0x2f   :  { %789 = vmatprep.subr.bf16.mxu0 %v853_v7  ;;  %832 = vmatprep.subr.bf16.mxu1 %v853_v7 }
  0x32   :  { %790 = vmatpush3.bf16.msra.mxu0 %v853_v7  ;;  %840 = vmatpush3.bf16.msra.mxu1 %v853_v7 }
  0x33   :  { %791 = vmatprep.subr.bf16.mxu0 %v854_v8  ;;  %833 = vmatprep.subr.bf16.mxu1 %v854_v8 }
  0x36   :  { %792 = vmatpush3.bf16.msra.mxu0 %v854_v8  ;;  %841 = vmatpush3.bf16.msra.mxu1 %v854_v8 }
  0x37   :  { %793 = vmatprep.subr.bf16.mxu0 %v855_v9  ;;  %834 = vmatprep.subr.bf16.mxu1 %v855_v9 }
  0x3a   :  { %794 = vmatpush3.bf16.msra.mxu0 %v855_v9  ;;  %842 = vmatpush3.bf16.msra.mxu1 %v855_v9 }
  0x3d   :  { %796 = vmatmul.mubr.bf16.vlgmr.msra.gmra.mxu0 %v858_v10  ;;  %812 = vmatmul.mubr.bf16.vlgmr.msra.gmra.mxu1 %v859_v11 }
  0x3e   :  { %799 = vmatprep.mubr.bf16.mxu0 %v860_v12  ;;  %815 = vmatprep.mubr.bf16.mxu1 %v861_v13 }
  0x45   :  { %800 = vmatmul.mubr.bf16.gmra.mxu0 %v862_v14  ;;  %816 = vmatmul.mubr.bf16.gmra.mxu1 %v863_v15 }
  0x46   :  { %803 = vmatprep.mubr.bf16.mxu0 %v864_v16  ;;  %819 = vmatprep.mubr.bf16.mxu1 %v865_v17 }
  0x4d   :  { %804 = vmatmul.mubr.bf16.gmra.mxu0 %v866_v18  ;;  %820 = vmatmul.mubr.bf16.gmra.mxu1 %v867_v19 }
  0x4e   :  { %807 = vmatprep.mubr.bf16.mxu0 %v868_v20  ;;  %823 = vmatprep.mubr.bf16.mxu1 %v869_v21 }
  0x55   :  { %808 = vmatmul.mubr.bf16.gmra.mxu0 %v870_v22  ;;  %824 = vmatmul.mubr.bf16.gmra.mxu1 %v871_v23 }
  0xfd   :  { %v797_v24 = vpop.f32.mrf.mxu0  ;;  %v813_v25 = vpop.f32.mrf.mxu1 }
  0xff   :  { %v267_v26 = vpop.f32.mrf.mxu0  ;;  %v331_v27 = vpop.f32.mrf.mxu1 }
 0x101   :  { %v798_v28 = vpop.f32.mrf.mxu0  ;;  %v814_v29 = vpop.f32.mrf.mxu1 }
 0x102   :  { %v668_v30 = vpack.c.bf16 %v798_v28, %v797_v24  ;;  %v708_v31 = vpack.c.bf16 %v814_v29, %v813_v25 }
 0x103   :  { %v270_v32 = vpop.f32.mrf.mxu0  ;;  %v334_v33 = vpop.f32.mrf.mxu1 }
 0x104   :  { %740 = vst [vmem:[#allocation7 + $0x8] sm:$0xff] %v668_v30   ;;  %748 = vst [vmem:[#allocation7 + $0x48] sm:$0xff] %v708_v31   ;;  %v663_v34 = vpack.c.bf16 %v270_v32, %v267_v26  ;;  %v703_v35 = vpack.c.bf16 %v334_v33, %v331_v27 }
 0x105   :  { %v801_v36 = vpop.f32.mrf.mxu0  ;;  %v817_v37 = vpop.f32.mrf.mxu1 }
 0x106   :  { %664 = vst [vmem:[#allocation7] sm:$0xff] %v663_v34   ;;  %747 = vst [vmem:[#allocation7 + $0x40] sm:$0xff] %v703_v35  }
 0x107   :  { %v283_v38 = vpop.f32.mrf.mxu0  ;;  %v347_v39 = vpop.f32.mrf.mxu1 }
 0x109   :  { %v802_v40 = vpop.f32.mrf.mxu0  ;;  %v818_v41 = vpop.f32.mrf.mxu1 }
 0x10a   :  { %v678_v42 = vpack.c.bf16 %v802_v40, %v801_v36  ;;  %v718_v43 = vpack.c.bf16 %v818_v41, %v817_v37 }
 0x10b   :  { %v286_v44 = vpop.f32.mrf.mxu0  ;;  %v350_v45 = vpop.f32.mrf.mxu1 }
 0x10c   :  { %742 = vst [vmem:[#allocation7 + $0x18] sm:$0xff] %v678_v42   ;;  %750 = vst [vmem:[#allocation7 + $0x58] sm:$0xff] %v718_v43   ;;  %v673_v46 = vpack.c.bf16 %v286_v44, %v283_v38  ;;  %v713_v47 = vpack.c.bf16 %v350_v45, %v347_v39 }
 0x10d   :  { %v805_v48 = vpop.f32.mrf.mxu0  ;;  %v821_v49 = vpop.f32.mrf.mxu1 }
 0x10e   :  { %741 = vst [vmem:[#allocation7 + $0x10] sm:$0xff] %v673_v46   ;;  %749 = vst [vmem:[#allocation7 + $0x50] sm:$0xff] %v713_v47  }
 0x10f   :  { %v299_v50 = vpop.f32.mrf.mxu0  ;;  %v363_v51 = vpop.f32.mrf.mxu1 }
 0x111   :  { %v806_v52 = vpop.f32.mrf.mxu0  ;;  %v822_v53 = vpop.f32.mrf.mxu1 }
 0x112   :  { %v688_v54 = vpack.c.bf16 %v806_v52, %v805_v48  ;;  %v728_v55 = vpack.c.bf16 %v822_v53, %v821_v49 }
 0x113   :  { %v302_v56 = vpop.f32.mrf.mxu0  ;;  %v366_v57 = vpop.f32.mrf.mxu1 }
 0x114   :  { %744 = vst [vmem:[#allocation7 + $0x28] sm:$0xff] %v688_v54   ;;  %752 = vst [vmem:[#allocation7 + $0x68] sm:$0xff] %v728_v55   ;;  %v683_v58 = vpack.c.bf16 %v302_v56, %v299_v50  ;;  %v723_v59 = vpack.c.bf16 %v366_v57, %v363_v51 }
 0x115   :  { %v809_v60 = vpop.f32.mrf.mxu0  ;;  %v825_v61 = vpop.f32.mrf.mxu1 }
 0x116   :  { %743 = vst [vmem:[#allocation7 + $0x20] sm:$0xff] %v683_v58   ;;  %751 = vst [vmem:[#allocation7 + $0x60] sm:$0xff] %v723_v59  }
 0x117   :  { %v315_v62 = vpop.f32.mrf.mxu0  ;;  %v379_v63 = vpop.f32.mrf.mxu1 }
 0x119   :  { %v810_v0 = vpop.f32.mrf.mxu0  ;;  %v826_v1 = vpop.f32.mrf.mxu1 }
 0x11a   :  { %v698_v2 = vpack.c.bf16 %v810_v0, %v809_v60  ;;  %v738_v3 = vpack.c.bf16 %v826_v1, %v825_v61 }
 0x11b   :  { %v318_v4 = vpop.f32.mrf.mxu0  ;;  %v382_v5 = vpop.f32.mrf.mxu1 }
 0x11c   :  { %746 = vst [vmem:[#allocation7 + $0x38] sm:$0xff] %v698_v2   ;;  %754 = vst [vmem:[#allocation7 + $0x78] sm:$0xff] %v738_v3   ;;  %v693_v6 = vpack.c.bf16 %v318_v4, %v315_v62  ;;  %v733_v7 = vpack.c.bf16 %v382_v5, %v379_v63 }
 0x11e   :  { %745 = vst [vmem:[#allocation7 + $0x30] sm:$0xff] %v693_v6   ;;  %753 = vst [vmem:[#allocation7 + $0x70] sm:$0xff] %v733_v7  }
 0x11f   :  { %923 = shalt.err (!%p920_p0)
}
 0x120   :  { %565 = dma.vmem_to_hbm [thread:$0]  %s560_s1, 2048, %s978_s2, [#allocation4], %s939_s12, %s939_s12, %s940_s13  }
 0x121   :  { %936 = dma.done.wait [#allocation4], 2048  }
 0x122   :  { %937 = vsyncadd [#allocation4], 4294965248 }
 0x123   :  { %569 = vsyncpa [#allocation3], 1 }
 0x124   :  { %570 = vsyncpa [#allocation6], 1 }
 0x125   :  { %571 = vsyncpa [#allocation4], 1 }

</bundles_post_ra>
